<compile_context>
chip_gen: v7x
topology: tpu7x:2x2x1
jax: 0.10.0
libtpu: 0.0.40
codegen_flags: <defaults>
</compile_context>

<pallas_src>
import functools

import jax
import jax.numpy as jnp
from jax.experimental import pallas as pl
from jax.experimental.pallas import tpu as pltpu

HIDDEN = 16
LANE = 128


def _round_up(x, m):
    return ((x + m - 1) // m) * m


def _mlp_kernel(x_ref, w1_ref, b1_ref, w2_ref, b2_ref, o_ref):
    x = x_ref[...]                         # (TB, in) -- batch on sublanes
    w1 = w1_ref[...]                       # (16, in), resident
    if w1.dtype != x.dtype:                # optional bf16-x path (caller-provided)
        w1 = w1.astype(x.dtype)
    # hT[f, b] = sum_k W1[f, k] * x[b, k]  -> (16, TB): batch lands on lanes (MXU NT).
    hT = jax.lax.dot_general(
        w1, x,
        (((1,), (1,)), ((), ())),
        preferred_element_type=jnp.float32,
    )
    hT = jnp.maximum(hT + b1_ref[...], 0.0)                   # (16, TB) + (16, 1)
    # Second layer off the MXU: elementwise mul (VPU) + sublane reduce (XLU).
    z = jnp.sum(hT * w2_ref[...], axis=0, keepdims=True) + b2_ref[...]   # (1, TB)
    # sigmoid(z) * 10 (exact f32; exp on the EUP slot).
    o_ref[...] = (10.0 / (1.0 + jnp.exp(-z))).astype(o_ref.dtype)


@functools.partial(jax.jit, static_argnames=("target_tile_bytes",))
def recommended_movies_forward(x, w1, b1, w2, b2, *, target_tile_bytes=8 * 1024 * 1024):
    """x: (B, input_size). Params in PyTorch nn.Linear orientation:
    w1 (16, in), b1 (16,), w2 (1, 16), b2 (1,). Returns (B, 1) f32."""
    B, in_features = x.shape
    in_pad = _round_up(in_features, LANE)          # lane padding of the minor dim
    row_bytes = in_pad * x.dtype.itemsize          # VMEM bytes per streamed row

    # Adaptive batch tile (multiples of 128 lanes on the output axis):
    #  * ~target_tile_bytes of x per grid step (multi-MiB -> near HBM roofline),
    #  * <= ceil(B/2) rounded to 128 so v7x megacore sharding gets >=2 steps,
    #  * <= round_up(B, 128) so tiny batches stay a single small tile.
    tb = max(LANE, (target_tile_bytes // row_bytes) // LANE * LANE)
    tb = min(tb, max(LANE, _round_up(pl.cdiv(B, 2), LANE)))
    tb = min(tb, _round_up(B, LANE))

    grid = (pl.cdiv(B, tb),)
    b_pad = grid[0] * tb                           # padded *output* columns only

    # Explicit VMEM budget (double-buffered x, hidden (16,TB) intermediate,
    # double-buffered output, resident weights) + headroom.  Raise the scoped
    # limit past the v5e 16 MiB default; stays far below the v7x 64 MiB core.
    vmem_need = (2 * tb * row_bytes + tb * HIDDEN * 4 + 2 * tb * 4
                 + HIDDEN * in_pad * 4 + (4 << 20))
    vmem_limit = int(max(32 << 20, vmem_need))

    # Kernel-side parameter layouts (tiny reshapes, done once by XLA).
    w1_k = w1.astype(jnp.float32)                        # (16, in)
    b1_k = b1.reshape(HIDDEN, 1).astype(jnp.float32)     # (16, 1)
    w2_k = w2.reshape(HIDDEN, 1).astype(jnp.float32)     # (16, 1)
    b2_k = b2.reshape(1, 1).astype(jnp.float32)          # (1, 1)

    cost = pl.CostEstimate(
        flops=2 * B * in_features * HIDDEN + 4 * B * HIDDEN,
        transcendentals=B,
        bytes_accessed=(x.size * x.dtype.itemsize + b_pad * 4
                        + 4 * (HIDDEN * in_features + 2 * HIDDEN + 1)),
    )

    out = pl.pallas_call(
        _mlp_kernel,
        grid=grid,
        in_specs=[
            # x streams unpadded; the ragged last block reads unspecified data
            # past row B -- it stays row-local and those columns are discarded.
            pl.BlockSpec((tb, in_features), lambda i: (i, 0)),
            pl.BlockSpec((HIDDEN, in_features), lambda i: (0, 0)),  # resident W1
            pl.BlockSpec((HIDDEN, 1), lambda i: (0, 0)),            # resident b1
            pl.BlockSpec((HIDDEN, 1), lambda i: (0, 0)),            # resident W2
            pl.BlockSpec((1, 1), lambda i: (0, 0)),                 # resident b2
        ],
        out_specs=pl.BlockSpec((1, tb), lambda i: (0, i)),          # lane-dense
        out_shape=jax.ShapeDtypeStruct((1, b_pad), jnp.float32),
        compiler_params=pltpu.CompilerParams(
            dimension_semantics=("parallel",),
            vmem_limit_bytes=vmem_limit,
        ),
        cost_estimate=cost,
    )(x, w1_k, b1_k, w2_k, b2_k)

    return out.reshape(-1)[:B].reshape(B, 1)


def init_params(key, input_size):
    """Mirrors nn.Linear init: uniform(-1/sqrt(fan_in), 1/sqrt(fan_in)),
    stored in PyTorch (out_features, in_features) orientation."""
    k1, k2, k3, k4 = jax.random.split(key, 4)
    bound1 = 1.0 / (input_size ** 0.5)
    bound2 = 1.0 / (HIDDEN ** 0.5)
    w1 = jax.random.uniform(k1, (HIDDEN, input_size), jnp.float32, -bound1, bound1)
    b1 = jax.random.uniform(k2, (HIDDEN,), jnp.float32, -bound1, bound1)
    w2 = jax.random.uniform(k3, (1, HIDDEN), jnp.float32, -bound2, bound2)
    b2 = jax.random.uniform(k4, (1,), jnp.float32, -bound2, bound2)
    return w1, b1, w2, b2


def reference_forward(x, w1, b1, w2, b2):
    h = jnp.maximum(x @ w1.T + b1, 0.0)
    return jax.nn.sigmoid(h @ w2.T + b2) * 10.0


if __name__ == "__main__":
    key = jax.random.PRNGKey(0)
    kx, kp, kx2 = jax.random.split(key, 3)

    input_size = 32
    w1, b1, w2, b2 = init_params(kp, input_size)

    # Small case (single partial tile, no wrapper-side padding of x).
    x_small = jax.random.normal(kx, (8, input_size), jnp.float32)
    out_small = jax.block_until_ready(
        recommended_movies_forward(x_small, w1, b1, w2, b2))
    ref_small = reference_forward(x_small, w1, b1, w2, b2)
    assert out_small.shape == (8, 1)
    assert jnp.allclose(out_small, ref_small, atol=1e-5, rtol=1e-5)

    # Multi-tile + ragged last block (exercises the grid, resident weights,
    # the adaptive tile cap, and the no-pad edge-block handling).
    x_big = jax.random.normal(kx2, (300, input_size), jnp.float32)
    out_big = jax.block_until_ready(
        recommended_movies_forward(x_big, w1, b1, w2, b2))
    ref_big = reference_forward(x_big, w1, b1, w2, b2)
    assert out_big.shape == (300, 1)
    assert jnp.allclose(out_big, ref_big, atol=1e-5, rtol=1e-5)

    print("KERNEL_OK")
</pallas_src>

<mosaic_0001>
module attributes {stable_mosaic.version = 11 : i64} {
  func.func @_mlp_kernel(%arg0: i32, %arg1: memref<128x32xf32, #tpu.memory_space<vmem>>, %arg2: memref<16x32xf32, #tpu.memory_space<vmem>>, %arg3: memref<16x1xf32, #tpu.memory_space<vmem>>, %arg4: memref<16x1xf32, #tpu.memory_space<vmem>>, %arg5: memref<1x1xf32, #tpu.memory_space<vmem>>, %arg6: memref<1x128xf32, #tpu.memory_space<vmem>>) attributes {dimension_semantics = [#tpu.dimension_semantics<parallel>], iteration_bounds = array<i64: 1>, scalar_prefetch = 0 : i64, scratch_operands = 0 : i64, tpu.core_type = #tpu.core_type<tc>, window_params = [{transform_indices = @transform_0, window_bounds = array<i64: 128, 32>}, {pipeline_mode = #tpu.pipeline_mode<synchronous>, transform_indices = @transform_1, window_bounds = array<i64: 16, 32>}, {pipeline_mode = #tpu.pipeline_mode<synchronous>, transform_indices = @transform_2, window_bounds = array<i64: 16, 1>}, {pipeline_mode = #tpu.pipeline_mode<synchronous>, transform_indices = @transform_3, window_bounds = array<i64: 16, 1>}, {pipeline_mode = #tpu.pipeline_mode<synchronous>, transform_indices = @transform_4, window_bounds = array<i64: 1, 1>}, {transform_indices = @transform_5, window_bounds = array<i64: 1, 128>}]} {
    %c0 = arith.constant 0 : index
    %c0_0 = arith.constant 0 : index
    %0 = vector.load %arg1[%c0, %c0_0] : memref<128x32xf32, #tpu.memory_space<vmem>>, vector<128x32xf32>
    %c0_1 = arith.constant 0 : index
    %c0_2 = arith.constant 0 : index
    %1 = vector.load %arg2[%c0_1, %c0_2] : memref<16x32xf32, #tpu.memory_space<vmem>>, vector<16x32xf32>
    %cst = arith.constant dense<0.000000e+00> : vector<16x128xf32>
    %2 = tpu.matmul %1, %0, %cst {dimension_numbers = #tpu.dot_dimension_numbers<[1], [1], [0], [0], [0, 0, 1, 0], [], []>} : vector<16x32xf32>, vector<128x32xf32>, vector<16x128xf32> -> vector<16x128xf32>
    %c0_3 = arith.constant 0 : index
    %c0_4 = arith.constant 0 : index
    %3 = vector.load %arg3[%c0_3, %c0_4] : memref<16x1xf32, #tpu.memory_space<vmem>>, vector<16x1xf32>
    %4 = vector.broadcast %3 : vector<16x1xf32> to vector<16x128xf32>
    %5 = arith.addf %2, %4 : vector<16x128xf32>
    %cst_5 = arith.constant 0.000000e+00 : f32
    %6 = vector.broadcast %cst_5 : f32 to vector<16x128xf32>
    %7 = arith.maximumf %5, %6 : vector<16x128xf32>
    %c0_6 = arith.constant 0 : index
    %c0_7 = arith.constant 0 : index
    %8 = vector.load %arg4[%c0_6, %c0_7] : memref<16x1xf32, #tpu.memory_space<vmem>>, vector<16x1xf32>
    %9 = vector.broadcast %8 : vector<16x1xf32> to vector<16x128xf32>
    %10 = arith.mulf %7, %9 : vector<16x128xf32>
    %cst_8 = arith.constant dense<0.000000e+00> : vector<128xf32>
    %11 = vector.multi_reduction <add>, %10, %cst_8 [0] : vector<16x128xf32> to vector<128xf32>
    %12 = vector.shape_cast %11 : vector<128xf32> to vector<1x128xf32>
    %c0_9 = arith.constant 0 : index
    %c0_10 = arith.constant 0 : index
    %13 = vector.load %arg5[%c0_9, %c0_10] : memref<1x1xf32, #tpu.memory_space<vmem>>, vector<1x1xf32>
    %14 = vector.broadcast %13 : vector<1x1xf32> to vector<1x128xf32>
    %15 = arith.addf %12, %14 : vector<1x128xf32>
    %cst_11 = arith.constant 0.000000e+00 : f32
    %16 = vector.broadcast %cst_11 : f32 to vector<1x128xf32>
    %17 = arith.subf %16, %15 : vector<1x128xf32>
    %18 = math.exp %17 : vector<1x128xf32>
    %cst_12 = arith.constant 1.000000e+00 : f32
    %19 = vector.broadcast %cst_12 : f32 to vector<1x128xf32>
    %20 = arith.addf %19, %18 : vector<1x128xf32>
    %cst_13 = arith.constant 1.000000e+01 : f32
    %21 = vector.broadcast %cst_13 : f32 to vector<1x128xf32>
    %22 = arith.divf %21, %20 : vector<1x128xf32>
    %c0_14 = arith.constant 0 : index
    %c0_15 = arith.constant 0 : index
    %23 = vector.load %arg6[%c0_14, %c0_15] : memref<1x128xf32, #tpu.memory_space<vmem>>, vector<1x128xf32>
    tpu.vector_store %arg6[%c0_14, %c0_15], %22 {strides = array<i32>} : memref<1x128xf32, #tpu.memory_space<vmem>>, vector<1x128xf32>,
    return
  }
  func.func @transform_0(%arg0: i32) -> (i32, i32) {
    %c0_i32 = arith.constant 0 : i32
    %c0_i32_0 = arith.constant 0 : i32
    return %arg0, %c0_i32 : i32, i32
  }
  func.func @transform_1(%arg0: i32) -> (i32, i32) {
    %c0_i32 = arith.constant 0 : i32
    %c0_i32_0 = arith.constant 0 : i32
    %c0_i32_1 = arith.constant 0 : i32
    return %c0_i32, %c0_i32_0 : i32, i32
  }
  func.func @transform_2(%arg0: i32) -> (i32, i32) {
    %c0_i32 = arith.constant 0 : i32
    %c0_i32_0 = arith.constant 0 : i32
    %c0_i32_1 = arith.constant 0 : i32
    return %c0_i32, %c0_i32_0 : i32, i32
  }
  func.func @transform_3(%arg0: i32) -> (i32, i32) {
    %c0_i32 = arith.constant 0 : i32
    %c0_i32_0 = arith.constant 0 : i32
    %c0_i32_1 = arith.constant 0 : i32
    return %c0_i32, %c0_i32_0 : i32, i32
  }
  func.func @transform_4(%arg0: i32) -> (i32, i32) {
    %c0_i32 = arith.constant 0 : i32
    %c0_i32_0 = arith.constant 0 : i32
    %c0_i32_1 = arith.constant 0 : i32
    return %c0_i32, %c0_i32_0 : i32, i32
  }
  func.func @transform_5(%arg0: i32) -> (i32, i32) {
    %c0_i32 = arith.constant 0 : i32
    %c0_i32_0 = arith.constant 0 : i32
    return %c0_i32, %arg0 : i32, i32
  }
}

</mosaic_0001>

<bundles_post_ra>
// kernel: recommended_movies_forward.1
= control target key start
LH: loop header
LB: loop body
LE: loop exit
PB: predicated region body
PF: predicated region fallthrough
CT: control target
= control target key end

     0   :  { %vm52_vm0 = vcmask 261120   ;;  %v353_v3 = vmov 0   ;;  %v211_v46 = vlaneseq  ;;  %s496_s0 = inlined_call_operand.vmem [shape: f32[8,32], index: 0, kind: input, shape index: {}]   ;;  %s497_s4 = inlined_call_operand.<no memory space> [shape: f32[1,1], index: 4, kind: input, shape index: {}]   ;;  %s498_s1 = inlined_call_operand.vmem [shape: f32[16,32], index: 1, kind: input, shape index: {}]   ;;  %s499_s2 = inlined_call_operand.vmem [shape: f32[16,1], index: 2, kind: input, shape index: {}]   ;;  %s500_s3 = inlined_call_operand.vmem [shape: f32[16,1], index: 3, kind: input, shape index: {}]   ;;  %s501_s5 = inlined_call_operand.vmem [shape: f32[1,128], index: 5, kind: output, shape index: {}]  }
   0x1   :  { %v22_v0 = vld [vmem:[%s496_s0] sm:$0xff]  ;;  %v23_v1 = vld [vmem:[%s496_s0 + $0x8] sm:$0xff]  ;;  %vm392_vm1 = vmpackc.low %vm52_vm0, %vm52_vm0  ;;  %347 = vset.pattern.permute.xlu0 %v353_v3  ;;  %348 = vset.pattern.permute.xlu1 %v353_v3  ;;  %v10_v4 = vstv %s497_s4 }
   0x2   :  { %v298_v5 = vpack.c.bf16 %v23_v1, %v22_v0  ;;  %v24_v6 = vld [vmem:[%s496_s0 + $0x10] sm:$0xff]  ;;  %v25_v7 = vld [vmem:[%s496_s0 + $0x18] sm:$0xff]  ;;  %11 = vst [vmem:[#allocation2] sm:$0x1] %v10_v4  ;;  %v38_v9 = vld [vmem:[%s498_s1] sm:$0xff]  ;;  %v212_v49 = vshrl.u32 %v211_v46, 7 }
   0x3   :  { %v304_v8 = vpack.c.bf16 %v25_v7, %v24_v6  ;;  %v26_v10 = vld [vmem:[%s496_s0 + $0x20] sm:$0xff]  ;;  %v27_v11 = vld [vmem:[%s496_s0 + $0x28] sm:$0xff]  ;;  %295 = vmatprep.mubr.msk.f32.mxu0 %vm52_vm0, %v38_v9  ;;  %v28_v18 = vld [vmem:[%s496_s0 + $0x30] sm:$0xff] }
   0x4   :  { %300 = vmatprep.subr.msk.bf16.mxu0 %vm392_vm1, %v298_v5  ;;  %v40_v12 = vld [vmem:[%s499_s2] sm:$0xff]  ;;  %v41_v14 = vld [vmem:[%s499_s2 + $0x8] sm:$0xff]  ;;  %v310_v15 = vpack.c.bf16 %v27_v11, %v26_v10  ;;  %v29_v19 = vld [vmem:[%s496_s0 + $0x38] sm:$0xff]  ;;  %v213_v52 = vsub.s32 0, %v212_v49 }
   0x5   :  { %303 = vmatpush3.bf16.xpose.msk.msra.mxu0 %vm392_vm1, %v298_v5  ;;  %44 = vperm.xlu0 %347, %v40_v12   ;;  %v184_v13 = vld [vmem:[%s500_s3] sm:$0xff]  ;;  %v185_v16 = vld [vmem:[%s500_s3 + $0x8] sm:$0xff]  ;;  %v316_v20 = vpack.c.bf16 %v29_v19, %v28_v18  ;;  %v32_v24 = vld [vmem:[%s496_s0 + $0x50] sm:$0xff] }
   0x6   :  { %306 = vmatprep.subr.msk.bf16.mxu0 %vm392_vm1, %v304_v8  ;;  %188 = vperm.xlu1 %348, %v184_v13   ;;  %v30_v21 = vld [vmem:[%s496_s0 + $0x40] sm:$0xff]  ;;  %v31_v22 = vld [vmem:[%s496_s0 + $0x48] sm:$0xff]  ;;  %v33_v25 = vld [vmem:[%s496_s0 + $0x58] sm:$0xff] }
   0x7   :  { %v322_v23 = vpack.c.bf16 %v31_v22, %v30_v21  ;;  %v328_v26 = vpack.c.bf16 %v33_v25, %v32_v24  ;;  %v34_v27 = vld [vmem:[%s496_s0 + $0x60] sm:$0xff]  ;;  %v35_v28 = vld [vmem:[%s496_s0 + $0x68] sm:$0xff]  ;;  %v36_v30 = vld [vmem:[%s496_s0 + $0x70] sm:$0xff] }
   0x8   :  { %v334_v29 = vpack.c.bf16 %v35_v28, %v34_v27  ;;  %v37_v31 = vld [vmem:[%s496_s0 + $0x78] sm:$0xff]  ;;  %v39_v33 = vld [vmem:[%s498_s1 + $0x8] sm:$0xff] }
   0x9   :  { %49 = vperm.xlu0 %347, %v41_v14   ;;  %v205_v17 = vld [vmem:[#allocation2] sm:$0x1]  ;;  %v340_v32 = vpack.c.bf16 %v37_v31, %v36_v30 }
   0xa   :  { %193 = vperm.xlu1 %348, %v185_v16  }
   0xd   :  { %309 = vmatpush3.bf16.xpose.msk.msra.mxu0 %vm392_vm1, %v304_v8  ;;  %208 = vperm.xlu0 %347, %v205_v17  }
   0xe   :  { %312 = vmatprep.subr.msk.bf16.mxu0 %vm392_vm1, %v310_v15 }
  0x15   :  { %315 = vmatpush3.bf16.xpose.msk.msra.mxu0 %vm392_vm1, %v310_v15 }
  0x16   :  { %318 = vmatprep.subr.msk.bf16.mxu0 %vm392_vm1, %v316_v20 }
  0x1d   :  { %321 = vmatpush3.bf16.xpose.msk.msra.mxu0 %vm392_vm1, %v316_v20 }
  0x1e   :  { %324 = vmatprep.subr.msk.bf16.mxu0 %vm392_vm1, %v322_v23 }
  0x25   :  { %327 = vmatpush3.bf16.xpose.msk.msra.mxu0 %vm392_vm1, %v322_v23 }
  0x26   :  { %330 = vmatprep.subr.msk.bf16.mxu0 %vm392_vm1, %v328_v26 }
  0x2d   :  { %333 = vmatpush3.bf16.xpose.msk.msra.mxu0 %vm392_vm1, %v328_v26 }
  0x2e   :  { %336 = vmatprep.subr.msk.bf16.mxu0 %vm392_vm1, %v334_v29 }
  0x35   :  { %339 = vmatpush3.bf16.xpose.msk.msra.mxu0 %vm392_vm1, %v334_v29 }
  0x36   :  { %342 = vmatprep.subr.msk.bf16.mxu0 %vm392_vm1, %v340_v32 }
  0x3d   :  { %345 = vmatpush3.bf16.xpose.msk.msra.mxu0 %vm392_vm1, %v340_v32 }
  0x44   :  { %296 = vmatmul.mubr.msk.f32.vlgmr.msra.gmra.mrb[0].mxu0 %vm52_vm0, %v39_v33 }
  0x84   :  { %v45_v34 = vpop.permute.xlu0 %44 }
  0x85   :  { %v189_v35 = vpop.permute.xlu1 %188 }
  0x88   :  { %v50_v36 = vpop.permute.xlu0 %49 }
  0x89   :  { %v194_v42 = vpop.permute.xlu1 %193 }
  0x8c   :  { %v209_v54 = vpop.permute.xlu0 %208 }
  0x8d   :  { %v214_v56 = vrot.slane %v209_v54, %v213_v52 }
 0x117   :  { %v297_v37 = vpop.f32.mrb[0].mxu0 }
 0x118   :  { %v179_v38 = vadd.f32 %v297_v37, %v50_v36  ;;  %v173_v39 = vpop.f32.mrb[1].mxu0 }
 0x119   :  { %v174_v40 = vadd.f32 %v173_v39, %v45_v34 }
 0x11a   :  { %v183_v41 = vmax.f32 %v179_v38, 0.0 }
 0x11b   :  { %v182_v43 = vmax.f32 %v174_v40, 0.0 }
 0x11c   :  { %v197_v44 = vmul.f32 %v194_v42, %v183_v41 }
 0x11d   :  { %v196_v45 = vmul.f32 %v189_v35, %v182_v43 }
 0x11f   :  { %v198_v47 = vadd.f32 %v197_v44, %v196_v45 }
 0x121   :  { %v199_v48 = vrot.slane %v198_v47, 4 }
 0x123   :  { %v200_v50 = vadd.f32 %v199_v48, %v198_v47 }
 0x125   :  { %v201_v51 = vrot.slane %v200_v50, 2 }
 0x127   :  { %v202_v53 = vadd.f32 %v201_v51, %v200_v50 }
 0x129   :  { %v203_v55 = vrot.slane %v202_v53, 1 }
 0x12b   :  { %v204_v57 = vadd.f32 %v203_v55, %v202_v53 }
 0x12d   :  { %v215_v58 = vadd.f32 %v214_v56, %v204_v57 }
 0x12f   :  { %v216_v59 = vsub.f32 0.0, %v215_v58 }
 0x131   :  { %v217_v60 = vmul.f32 1.442695, %v216_v59 }
 0x133   :  { %349 = vpow2.f32 %v217_v60 }
 0x13d   :  { %v350_v61 = vpop.eup %349 }
 0x13e   :  { %v219_v62 = vadd.f32 1.0, %v350_v61 }
 0x140   :  { %351 = vrcp.f32 %v219_v62 }
 0x14a   :  { %v352_v63 = vpop.eup %351 }
 0x14b   :  { %v221_v0 = vmul.f32 10.0, %v352_v63 }
 0x14d   :  { %222 = vst [vmem:[%s501_s5] sm:$0x1] %v221_v0 }

</bundles_post_ra>
